<compile_context>
chip_gen: v7x
topology: tpu7x:2x2x1
jax: 0.10.0
libtpu: 0.0.40
codegen_flags: <defaults>
</compile_context>

<pallas_src>
import jax
import jax.numpy as jnp
from jax.experimental import pallas as pl
from jax.experimental.pallas import tpu as pltpu

KSIZE = 7
PAD = 3


def cbam_kernel(x_ref, w1t_ref, w2t_ref, pT_ref, o_ref):
    # x_ref block: (Bt, C, H*W) for the current batch tile (lane-dense layout).
    x = x_ref[...]                                     # keep input dtype for elementwise math
    bt = x.shape[0]

    # ---------------- Channel attention ----------------
    # Pool over the spatial (lane) axis; accumulate in f32.
    avg_c = jnp.mean(x, axis=2, dtype=jnp.float32)     # (Bt, C)  == AdaptiveAvgPool2d(1)
    max_c = jnp.max(x, axis=2).astype(jnp.float32)     # (Bt, C)  == AdaptiveMaxPool2d(1)

    # Fused shared MLP: one dot chain over the stacked [avg; max] matrix.
    v = jnp.concatenate([avg_c, max_c], axis=0)        # (2*Bt, C)
    h = jnp.dot(v, w1t_ref[...], preferred_element_type=jnp.float32)   # (2*Bt, Cr)
    h = jnp.maximum(h, 0.0)                                            # ReLU
    a = jnp.dot(h, w2t_ref[...], preferred_element_type=jnp.float32)   # (2*Bt, C)
    ca = jax.nn.sigmoid(a[:bt] + a[bt:])               # (Bt, C)

    out1 = x * ca.astype(x.dtype)[:, :, None]          # (Bt, C, H*W) channel-attended

    # ---------------- Spatial attention ----------------
    avg_s = jnp.mean(out1, axis=1, dtype=jnp.float32)  # (Bt, H*W) mean over channels
    max_s = jnp.max(out1, axis=1).astype(jnp.float32)  # (Bt, H*W) max  over channels
    s = jnp.concatenate([avg_s, max_s], axis=1)        # (Bt, 2*H*W)

    # Exact 7x7 pad-3 cross-correlation as a single matmul with the precomputed operator.
    conv = jnp.dot(s, pT_ref[...], preferred_element_type=jnp.float32)  # (Bt, H*W)
    sa = jax.nn.sigmoid(conv)                           # (Bt, H*W)

    o_ref[...] = (out1 * sa.astype(x.dtype)[:, None, :]).astype(o_ref.dtype)


def _build_conv_operator(conv_w, H, W):
    """Dense (2*H*W, H*W) operator equivalent to Conv2d(2, 1, 7, padding=3, bias=False).

    conv_out[b, j] = sum_k s[b, k] * P[k, j], with s = [avg_map.ravel(), max_map.ravel()].
    Exact reformulation: the zero padding is folded into masked taps.
    """
    dh = jnp.arange(H)[:, None] - jnp.arange(H)[None, :] + PAD   # (H_in, H_out)
    dw = jnp.arange(W)[:, None] - jnp.arange(W)[None, :] + PAD   # (W_in, W_out)
    vh = (dh >= 0) & (dh < KSIZE)
    vw = (dw >= 0) & (dw < KSIZE)
    dh_c = jnp.clip(dh, 0, KSIZE - 1)
    dw_c = jnp.clip(dw, 0, KSIZE - 1)
    taps = conv_w[:, dh_c[:, :, None, None], dw_c[None, None, :, :]]  # (2, Hi, Ho, Wi, Wo)
    mask = vh[:, :, None, None] & vw[None, None, :, :]                # (Hi, Ho, Wi, Wo)
    taps = jnp.where(mask[None], taps, 0.0)
    # rows: (c, h_in, w_in) flattened; cols: (h_out, w_out) flattened
    return taps.transpose(0, 1, 3, 2, 4).reshape(2 * H * W, H * W).astype(jnp.float32)


def _pick_batch_tile(B, max_tile=8):
    """Largest divisor of B (<= max_tile) that still leaves >= 2 grid steps (v7x: 2 TCs)."""
    best = 1
    for t in range(1, min(B, max_tile) + 1):
        if B % t == 0 and (B // t >= 2 or B == 1):
            best = t
    return best


def cbam_forward(x, fc1_w, fc2_w, conv_w):
    """x: (B, C, H, W); fc1_w: (C//16, C); fc2_w: (C, C//16); conv_w: (2, 7, 7)."""
    B, C, H, W = x.shape
    Cr = fc1_w.shape[0]
    HW = H * W

    x2 = x.reshape(B, C, HW)                         # lane-dense layout for the kernel
    w1t = fc1_w.T.astype(jnp.float32)                # (C, Cr) pre-transposed
    w2t = fc2_w.T.astype(jnp.float32)                # (Cr, C) pre-transposed
    pT = _build_conv_operator(conv_w.astype(jnp.float32), H, W)   # (2*HW, HW)

    Bt = _pick_batch_tile(B)

    # NOTE: whole (Bt, C, HW) slabs live in VMEM; for much larger C/H/W add a channel
    # tiling grid axis and set pltpu.CompilerParams(vmem_limit_bytes=...) (v7x: 64 MiB).
    out2 = pl.pallas_call(
        cbam_kernel,
        out_shape=jax.ShapeDtypeStruct((B, C, HW), x.dtype),
        grid=(B // Bt,),
        in_specs=[
            pl.BlockSpec((Bt, C, HW), lambda i: (i, 0, 0)),
            pl.BlockSpec((C, Cr), lambda i: (0, 0)),
            pl.BlockSpec((Cr, C), lambda i: (0, 0)),
            pl.BlockSpec((2 * HW, HW), lambda i: (0, 0)),
        ],
        out_specs=pl.BlockSpec((Bt, C, HW), lambda i: (i, 0, 0)),
        compiler_params=pltpu.CompilerParams(dimension_semantics=("parallel",)),
    )(x2, w1t, w2t, pT)
    return out2.reshape(B, C, H, W)


def cbam_reference(x, fc1_w, fc2_w, conv_w):
    """Pure-JAX reference mirroring the PyTorch CBAM forward."""
    B, C, H, W = x.shape
    avg_c = jnp.mean(x, axis=(2, 3))                    # (B, C)
    max_c = jnp.max(x, axis=(2, 3))                     # (B, C)

    def mlp(v):
        return jnp.maximum(v @ fc1_w.T, 0.0) @ fc2_w.T

    ca = jax.nn.sigmoid(mlp(avg_c) + mlp(max_c))        # (B, C)
    out1 = x * ca[:, :, None, None]

    avg_s = jnp.mean(out1, axis=1, keepdims=True)
    max_s = jnp.max(out1, axis=1, keepdims=True)
    inp = jnp.concatenate([avg_s, max_s], axis=1)       # (B, 2, H, W)
    padded = jnp.pad(inp, ((0, 0), (0, 0), (PAD, PAD), (PAD, PAD)))
    conv = jnp.zeros((B, H, W), jnp.float32)
    for c in range(2):
        for ki in range(KSIZE):
            for kj in range(KSIZE):
                conv = conv + padded[:, c, ki:ki + H, kj:kj + W] * conv_w[c, ki, kj]
    sa = jax.nn.sigmoid(conv)[:, None, :, :]
    return out1 * sa


if __name__ == "__main__":
    # dim must be >= ratio(16) for the PyTorch module to be well-formed; use dim=32.
    B, C, H, W = 2, 32, 16, 16
    Cr = C // 16

    key = jax.random.PRNGKey(0)
    kx, k1, k2, k3 = jax.random.split(key, 4)
    x = jax.random.normal(kx, (B, C, H, W), dtype=jnp.float32)
    fc1_w = 0.1 * jax.random.normal(k1, (Cr, C), dtype=jnp.float32)
    fc2_w = 0.1 * jax.random.normal(k2, (C, Cr), dtype=jnp.float32)
    conv_w = 0.1 * jax.random.normal(k3, (2, KSIZE, KSIZE), dtype=jnp.float32)

    out = jax.block_until_ready(cbam_forward(x, fc1_w, fc2_w, conv_w))
    ref = cbam_reference(x, fc1_w, fc2_w, conv_w)

    assert out.shape == (B, C, H, W)
    # Tolerance allows for MXU f32 matmul pass rounding vs the scalar-loop reference conv.
    assert bool(jnp.allclose(out, ref, atol=2e-3, rtol=2e-3)), "mismatch vs reference"
    print("KERNEL_OK")
</pallas_src>

<mosaic_0001>
module attributes {stable_mosaic.version = 11 : i64} {
  func.func @cbam_kernel(%arg0: i32, %arg1: memref<1x32x256xf32, #tpu.memory_space<vmem>>, %arg2: memref<32x2xf32, #tpu.memory_space<vmem>>, %arg3: memref<2x32xf32, #tpu.memory_space<vmem>>, %arg4: memref<512x256xf32, #tpu.memory_space<vmem>>, %arg5: memref<1x32x256xf32, #tpu.memory_space<vmem>>) attributes {dimension_semantics = [#tpu.dimension_semantics<parallel>], iteration_bounds = array<i64: 2>, scalar_prefetch = 0 : i64, scratch_operands = 0 : i64, tpu.core_type = #tpu.core_type<tc>, window_params = [{transform_indices = @transform_0, window_bounds = array<i64: 1, 32, 256>}, {pipeline_mode = #tpu.pipeline_mode<synchronous>, transform_indices = @transform_1, window_bounds = array<i64: 32, 2>}, {pipeline_mode = #tpu.pipeline_mode<synchronous>, transform_indices = @transform_2, window_bounds = array<i64: 2, 32>}, {pipeline_mode = #tpu.pipeline_mode<synchronous>, transform_indices = @transform_3, window_bounds = array<i64: 512, 256>}, {transform_indices = @transform_4, window_bounds = array<i64: 1, 32, 256>}]} {
    %c0 = arith.constant 0 : index
    %c0_0 = arith.constant 0 : index
    %c0_1 = arith.constant 0 : index
    %0 = vector.load %arg1[%c0, %c0_0, %c0_1] : memref<1x32x256xf32, #tpu.memory_space<vmem>>, vector<1x32x256xf32>
    %cst = arith.constant dense<0.000000e+00> : vector<1x32xf32>
    %1 = vector.multi_reduction <add>, %0, %cst [2] : vector<1x32x256xf32> to vector<1x32xf32>
    %cst_2 = arith.constant 2.560000e+02 : f32
    %2 = vector.broadcast %cst_2 : f32 to vector<1x32xf32>
    %3 = arith.divf %1, %2 : vector<1x32xf32>
    %cst_3 = arith.constant dense<0xFF800000> : vector<1x32xf32>
    %4 = vector.multi_reduction <maximumf>, %0, %cst_3 [2] : vector<1x32x256xf32> to vector<1x32xf32>
    %5 = tpu.concatenate %3, %4 in 0 : vector<1x32xf32>, vector<1x32xf32> -> vector<2x32xf32>
    %c0_4 = arith.constant 0 : index
    %c0_5 = arith.constant 0 : index
    %6 = vector.load %arg2[%c0_4, %c0_5] : memref<32x2xf32, #tpu.memory_space<vmem>>, vector<32x2xf32>
    %cst_6 = arith.constant dense<0.000000e+00> : vector<2x2xf32>
    %7 = tpu.matmul %5, %6, %cst_6 {dimension_numbers = #tpu.dot_dimension_numbers<[1], [0], [0], [1], [0, 0, 1, 1], [], []>} : vector<2x32xf32>, vector<32x2xf32>, vector<2x2xf32> -> vector<2x2xf32>
    %cst_7 = arith.constant 0.000000e+00 : f32
    %8 = vector.broadcast %cst_7 : f32 to vector<2x2xf32>
    %9 = arith.maximumf %7, %8 : vector<2x2xf32>
    %c0_8 = arith.constant 0 : index
    %c0_9 = arith.constant 0 : index
    %10 = vector.load %arg3[%c0_8, %c0_9] : memref<2x32xf32, #tpu.memory_space<vmem>>, vector<2x32xf32>
    %cst_10 = arith.constant dense<0.000000e+00> : vector<2x32xf32>
    %11 = tpu.matmul %9, %10, %cst_10 {dimension_numbers = #tpu.dot_dimension_numbers<[1], [0], [0], [1], [0, 0, 1, 1], [], []>} : vector<2x2xf32>, vector<2x32xf32>, vector<2x32xf32> -> vector<2x32xf32>
    %12 = vector.extract_strided_slice %11 {offsets = [0, 0], sizes = [1, 32], strides = [1, 1]} : vector<2x32xf32> to vector<1x32xf32>
    %13 = vector.extract_strided_slice %11 {offsets = [1, 0], sizes = [1, 32], strides = [1, 1]} : vector<2x32xf32> to vector<1x32xf32>
    %14 = arith.addf %12, %13 : vector<1x32xf32>
    %15 = arith.negf %14 : vector<1x32xf32>
    %16 = math.exp %15 : vector<1x32xf32>
    %cst_11 = arith.constant 1.000000e+00 : f32
    %17 = vector.broadcast %cst_11 : f32 to vector<1x32xf32>
    %18 = arith.addf %17, %16 : vector<1x32xf32>
    %19 = arith.divf %17, %18 : vector<1x32xf32>
    %20 = vector.shape_cast %19 : vector<1x32xf32> to vector<1x32x1xf32>
    %21 = vector.broadcast %20 : vector<1x32x1xf32> to vector<1x32x256xf32>
    %22 = arith.mulf %0, %21 : vector<1x32x256xf32>
    %cst_12 = arith.constant dense<0.000000e+00> : vector<1x256xf32>
    %23 = vector.multi_reduction <add>, %22, %cst_12 [1] : vector<1x32x256xf32> to vector<1x256xf32>
    %cst_13 = arith.constant 3.200000e+01 : f32
    %24 = vector.broadcast %cst_13 : f32 to vector<1x256xf32>
    %25 = arith.divf %23, %24 : vector<1x256xf32>
    %cst_14 = arith.constant dense<0xFF800000> : vector<1x256xf32>
    %26 = vector.multi_reduction <maximumf>, %22, %cst_14 [1] : vector<1x32x256xf32> to vector<1x256xf32>
    %27 = tpu.concatenate %25, %26 in 1 : vector<1x256xf32>, vector<1x256xf32> -> vector<1x512xf32>
    %c0_15 = arith.constant 0 : index
    %c0_16 = arith.constant 0 : index
    %28 = vector.load %arg4[%c0_15, %c0_16] : memref<512x256xf32, #tpu.memory_space<vmem>>, vector<512x256xf32>
    %cst_17 = arith.constant dense<0.000000e+00> : vector<1x256xf32>
    %29 = tpu.matmul %27, %28, %cst_17 {dimension_numbers = #tpu.dot_dimension_numbers<[1], [0], [0], [1], [0, 0, 1, 1], [], []>} : vector<1x512xf32>, vector<512x256xf32>, vector<1x256xf32> -> vector<1x256xf32>
    %30 = arith.negf %29 : vector<1x256xf32>
    %31 = math.exp %30 : vector<1x256xf32>
    %cst_18 = arith.constant 1.000000e+00 : f32
    %32 = vector.broadcast %cst_18 : f32 to vector<1x256xf32>
    %33 = arith.addf %32, %31 : vector<1x256xf32>
    %34 = arith.divf %32, %33 : vector<1x256xf32>
    %35 = vector.shape_cast %34 : vector<1x256xf32> to vector<1x1x256xf32>
    %36 = vector.broadcast %35 : vector<1x1x256xf32> to vector<1x32x256xf32>
    %37 = arith.mulf %22, %36 : vector<1x32x256xf32>
    %c0_19 = arith.constant 0 : index
    %c0_20 = arith.constant 0 : index
    %c0_21 = arith.constant 0 : index
    %38 = vector.load %arg5[%c0_19, %c0_20, %c0_21] : memref<1x32x256xf32, #tpu.memory_space<vmem>>, vector<1x32x256xf32>
    tpu.vector_store %arg5[%c0_19, %c0_20, %c0_21], %37 {strides = array<i32>} : memref<1x32x256xf32, #tpu.memory_space<vmem>>, vector<1x32x256xf32>,
    return
  }
  func.func @transform_0(%arg0: i32) -> (i32, i32, i32) {
    %c0_i32 = arith.constant 0 : i32
    %c0_i32_0 = arith.constant 0 : i32
    %c0_i32_1 = arith.constant 0 : i32
    return %arg0, %c0_i32, %c0_i32_0 : i32, i32, i32
  }
  func.func @transform_1(%arg0: i32) -> (i32, i32) {
    %c0_i32 = arith.constant 0 : i32
    %c0_i32_0 = arith.constant 0 : i32
    %c0_i32_1 = arith.constant 0 : i32
    return %c0_i32, %c0_i32_0 : i32, i32
  }
  func.func @transform_2(%arg0: i32) -> (i32, i32) {
    %c0_i32 = arith.constant 0 : i32
    %c0_i32_0 = arith.constant 0 : i32
    %c0_i32_1 = arith.constant 0 : i32
    return %c0_i32, %c0_i32_0 : i32, i32
  }
  func.func @transform_3(%arg0: i32) -> (i32, i32) {
    %c0_i32 = arith.constant 0 : i32
    %c0_i32_0 = arith.constant 0 : i32
    %c0_i32_1 = arith.constant 0 : i32
    return %c0_i32, %c0_i32_0 : i32, i32
  }
  func.func @transform_4(%arg0: i32) -> (i32, i32, i32) {
    %c0_i32 = arith.constant 0 : i32
    %c0_i32_0 = arith.constant 0 : i32
    %c0_i32_1 = arith.constant 0 : i32
    return %arg0, %c0_i32, %c0_i32_0 : i32, i32, i32
  }
}

</mosaic_0001>

<bundles_post_ra>
// kernel: tpu_custom_call.1
= control target key start
LH: loop header
LB: loop body
LE: loop exit
PB: predicated region body
PF: predicated region fallthrough
CT: control target
= control target key end

     0   :  { %9 = vsyncpa [#allocation3], 0  ;;  %s1707_s0 = inlined_call_operand.hbm [shape: f32[2,32,256], index: 0, kind: input, shape index: {}]   ;;  %s1708_s1 = inlined_call_operand.vmem [shape: f32[32,2], index: 1, kind: input, shape index: {}]   ;;  %s1709_s2 = inlined_call_operand.vmem [shape: f32[2,32], index: 2, kind: input, shape index: {}]   ;;  %s1710_s3 = inlined_call_operand.hbm [shape: f32[512,256], index: 3, kind: input, shape index: {}]   ;;  %s1711_s4 = inlined_call_operand.hbm [shape: f32[2,32,256], index: 4, kind: output, shape index: {}]  }
   0x1   :  { %11 = vsyncpa [#allocation3 + $0x1], 0 }
   0x2   :  { %12 = vsyncpa [#allocation6], 0 }
   0x3   :  { %13 = vsyncpa [#allocation4], 0 }
   0x4   :  { %15 = vsyncpa [#allocation4 + $0x1], 0  ;;  %s1387_s15 = smov 0   ;;  %s1389_s16 = smov 0  }
   0x5   :  { %s1391_s17 = smov 0   ;;  %s1393_s18 = smov 0  }
   0x6 LB: > { %s1408_s19 = sadd.s32 4294967295, %s1350_s18   ;;  %s963_s20 = sadd.s32 4294967294, %s1350_s18   ;;  %s1350_s18 = sphi %s1393_s18, %s1731_s18   ;;  %s1346_s17 = sphi %s1391_s17, %s1730_s17   ;;  %s1342_s16 = sphi %s1389_s16, %s1729_s16   ;;  %s1338_s15 = sphi %s1387_s15, %s1728_s15  }
   0x7   : > { %p41_p0 = scmp.ne.s32.totalorder %s1342_s16, %s1338_s15  ;;  %p1712_p1 = scmp.eq.s32.totalorder %s1408_s19, 0 }
   0x8   : > { %p134_p3 = scmp.eq.s32.totalorder %s963_s20, 1  ;;  %p964_p5 = scmp.ge.s32.totalorder %s1350_s18, 1 }
   0x9   : > { %p1417_p4 = por %p1712_p1, %p41_p0  ;;  %p141_p7 = scmp.lt.s32.totalorder %s1350_s18, 3 }
   0xa   : > { %p1422_p6 = por %p134_p3, %p41_p0  ;;  %s1352_s24 = smov [#allocation5]  }
   0xb   : > { %s1715_s21 = scalar_select %p1417_p4, 1, 0 }
   0xc   : > { %s1716_s22 = scalar_select %p1422_p6, 1, 0 }
   0xd   : > { %p1427_p8 = pnand %p964_p5, %p141_p7  ;;  %s159_s25 = sshll.u32 %s1352_s24, 4  ;;  %s1431_s25 = int_to_ptr.vmem [resolvable:$true] %s159_s25 }
   0xe   : > { %s1443_s27 = sadd.s32 1, %s1350_s18   ;;  %s28_s28 = sadd.s32 1, %s1346_s17 }
   0xf   : > { %s1717_s23 = scalar_select %p1427_p8, 1, 0 }
  0x10   : > { %p1154_p9 = pneg %p1427_p8  ;;  %s25_s29 = ssub.s32 %s1350_s18, %s1443_s27 }
  0x11   : > { %s1222_s6 = scalar_lea.hbm %s1710_s3, 16384 }
  0x12   : > { %p1438_p11 = pnand %p1154_p9, %p1712_p1  ;;  %p1223_p12 = scmp.ne.s32.totalorder %s1710_s3, %s1222_s6 }
  0x13   : > { %p1229_p5 = scmp.lt.u32.totalorder %s1222_s6, %s1710_s3 }
  0x14   : > { %p1224_p13 = pneg %p1438_p11 }
  0x16   : > { %p1225_p0 = pnand %p1224_p13, %p1223_p12 }
  0x18   : > { %p1226_p3 = pneg %p1225_p0 }
  0x1a   : > { %p1231_p7 = pnand %p1229_p5, %p1226_p3 }
  0x1c   : > { %1234 = shalt.err (!%p1231_p7)
}
  0x1d   : > { %s1235_s11 = scalar_lea.vmem %s1431_s25, 16384  ;;  %p1243_p2 = scmp.lt.s32.totalorder %s1431_s25, %s1431_s25 }
  0x1e   : > { %p1236_p9 = scmp.ne.s32.totalorder %s1431_s25, %s1235_s11  ;;  %p1244_p6 = scmp.lt.s32.totalorder %s1235_s11, %s1235_s11 }
  0x20   : > { %p1238_p10 = pnand %p1236_p9, %p1224_p13  ;;  %p1245_p4 = por %p1244_p6, %p1243_p2 }
  0x22   : > { %p1239_p1 = pneg %p1238_p10 }
  0x24   : > { %p1246_p8 = pnand %p1245_p4, %p1239_p1 }
  0x26   : > { %1249 = shalt.err (!%p1246_p8)
}
  0x27   : > { %s1353_s12 = smov 256   ;;  %s1354_s13 = smov 16  }
  0x28   : > { %1157 = dma.hbm_to_vmem [thread:$0]  (!%p1438_p11), %s1710_s3, 16384, %s1431_s25, [#allocation6], %s1353_s12, %s1353_s12, %s1354_s13  }
  0x29   : > { %p26_p1 = scmp.eq.s32.totalorder %s25_s29, 0  ;;  %p35_p2 = scmp.ne.s32.totalorder %s1346_s17, %s1342_s16 }
  0x2a   : > { %p36_p4 = scmp.eq.s32.totalorder %s1350_s18, 0  ;;  %p1167_p6 = scmp.lt.s32.totalorder %s1350_s18, 2 }
  0x2b   : > { %s1477_s24 = scalar_select %p26_p1, %s1346_s17, %s28_s28  }
  0x2c   : > { %p37_p8 = por %p36_p4, %p35_p2  ;;  %p1719_p10 = scmp.eq.s32.totalorder %s1408_s19, 1 }
  0x2d   : > { %s173_s26 = sand.u32 1, %s1346_s17   ;;  %s985_s5 = sshll.u32 %s1350_s18, 10 }
  0x2e   : > { %p1481_p12 = por %p1719_p10, %p35_p2  ;;  %s967_s6 = sshll.u32 %s173_s26, 6 }
  0x2f   : > { %s1490_s9 = scalar_lea.hbm %s1707_s0, %s985_s5  ;;  %s177_s25 = scalar_lea.vmem [#allocation2], %s967_s6 }
  0x30   : > { %s184_s28 = sshll.u32 %s177_s25, 4  ;;  %p1492_p11 = pnand %p1167_p6, %p37_p8  ;;  %s1496_s28 = int_to_ptr.vmem [resolvable:$true] %s184_s28 }
  0x31   : > { %s1498_s10 = scalar_lea.sflag [#allocation3], %s173_s26  ;;  %s1250_s11 = scalar_lea.hbm %s1490_s9, 1024 }
  0x32   : > { %p1251_p13 = scmp.ne.s32.totalorder %s1490_s9, %s1250_s11  ;;  %p1252_p0 = pneg %p1492_p11 }
  0x33   : > { %s1255_s5 = scalar_lea.hbm %s1707_s0, 2048  ;;  %p1256_p7 = scmp.lt.u32.totalorder %s1490_s9, %s1707_s0 }
  0x34   : > { %p1253_p3 = pnand %p1252_p0, %p1251_p13  ;;  %p1257_p9 = scmp.lt.u32.totalorder %s1255_s5, %s1250_s11 }
  0x35   : > { %p1259_p2 = scmp.lt.u32.totalorder %s1250_s11, %s1490_s9 }
  0x36   : > { %p1254_p5 = pneg %p1253_p3  ;;  %p1258_p1 = por %p1257_p9, %p1256_p7 }
  0x38   : > { %p1260_p4 = por %p1259_p2, %p1258_p1 }
  0x3a   : > { %p1261_p6 = pnand %p1260_p4, %p1254_p5 }
  0x3c   : > { %1264 = shalt.err (!%p1261_p6)
}
  0x3d   : > { %s1265_s26 = scalar_lea.vmem %s1496_s28, 1024  ;;  %s1355_s8 = smov [#allocation2]  }
  0x3e   : > { %p1266_p8 = scmp.ne.s32.totalorder %s1496_s28, %s1265_s26  ;;  %s1270_s25 = sshll.u32 %s1355_s8, 4  ;;  %s1271_s25 = int_to_ptr.vmem [resolvable:$false] %s1270_s25 }
  0x3f   : > { %s1272_s14 = scalar_lea.vmem %s1271_s25, 2048  ;;  %p1273_p3 = scmp.lt.s32.totalorder %s1496_s28, %s1271_s25 }
  0x40   : > { %p1268_p10 = pnand %p1266_p8, %p1252_p0  ;;  %p1274_p7 = scmp.lt.s32.totalorder %s1272_s14, %s1265_s26 }
  0x42   : > { %p1269_p13 = pneg %p1268_p10  ;;  %p1275_p9 = por %p1274_p7, %p1273_p3 }
  0x44   : > { %p1276_p1 = pnand %p1275_p9, %p1269_p13 }
  0x46   : > { %1279 = shalt.err (!%p1276_p1)
}
  0x47   : > { %1161 = dma.hbm_to_vmem [thread:$0]  (!%p1492_p11), %s1490_s9, 1024, %s1496_s28, %s1498_s10, %s1353_s12, %s1353_s12, %s1354_s13  }
  0x48   : > { %p1722_p0 = scmp.ne.s32.totalorder %s1717_s23, 0 }
  0x49   : > { %s1532_s11 = sand.u32 (!%p1722_p0), 1, %s1342_s16   ;;  %p1723_p5 = scmp.ne.s32.totalorder (!%p1722_p0), %s1715_s21, 0 }
  0x4a   : > { %196 = sbr.rel (%p1722_p0) target bundleno = 1110 (0x456), region = 36  ;;  %s971_s20 = sshll.u32 (!%p1722_p0), %s1532_s11, 6 }
  0x4b   : > { %s199_s5 = scalar_lea.sflag (!%p1722_p0), [#allocation3], %s1532_s11  ;;  %s202_s29 = scalar_lea.vmem (!%p1722_p0), [#allocation2], %s971_s20 }
  0x51   : > { %1325 = dma.done.wait (%p1723_p5), %s199_s5, 1024  }
  0x52   : > { %1327 = vsyncadd (%p1723_p5), %s199_s5, 4294966272  ;;  %p1724_p11 = scmp.eq.s32.totalorder %s1408_s19, 0 }
  0x54   : > { %1329 = dma.done.wait (%p1724_p11), [#allocation6], 16384   ;;  %p1725_p2 = pmov %p1724_p11 }
  0x55   : > { %v1546_v0 = vld [vmem:[%s202_s29 + $0x20] sm:$0xff]  ;;  %v1548_v1 = vld [vmem:[%s202_s29 + $0x28] sm:$0xff]  ;;  %v1556_v5 = vld [vmem:[%s202_s29 + $0x30] sm:$0xff]  ;;  %v1356_v19 = vmov 0.0|0.0   ;;  %vm1357_vm0 = vmmov 0   ;;  %v1358_v23 = vmov 0.0   ;;  %v272_v24 = vlaneseq }
  0x56   : > { %1331 = vsyncadd (%p1725_p2), [#allocation6], 4294950912  ;;  %v1550_v2 = vld [vmem:[%s202_s29] sm:$0xff]  ;;  %v245_v3 = vadd.f32 %v1548_v1, %v1546_v0  ;;  %v1554_v4 = vld [vmem:[%s202_s29 + $0x8] sm:$0xff]  ;;  %v262_v15 = vmax.f32 %v1546_v0, %v1548_v1  ;;  %1010 = vmatprep.subr.bf16.mxu0 %v1356_v19  ;;  %1002 = vmatprep.mubr.msk.f32.mxu0 %vm1357_vm0, %v1358_v23  ;;  %vm283_vm1 = vcmask 130112   ;;  %vm290_vm2 = vcmask 195712  }
  0x57   : > { %v1558_v6 = vld [vmem:[%s202_s29 + $0x38] sm:$0xff]  ;;  %v239_v7 = vadd.f32 %v1554_v4, %v1550_v2  ;;  %v1562_v8 = vld [vmem:[%s202_s29 + $0x10] sm:$0xff]  ;;  %v256_v13 = vmax.f32 %v1550_v2, %v1554_v4  ;;  %v326_v16 = vld [vmem:[%s1708_s1] sm:$0xff]  ;;  %1005 = vmatprep.subr.mxu1 %v1358_v23  ;;  %1007 = vmatprep.mubr.msk.f32.mxu1 %vm1357_vm0, %v1358_v23  ;;  %v273_v25 = vand.u32 127, %v272_v24  ;;  %v1590_v28 = vshrl.u32 %v272_v24, 7  ;;  %s986_s8 = sshll.u32 %s1408_s19, 10 }
  0x58   : > { %v1564_v9 = vld [vmem:[%s202_s29 + $0x18] sm:$0xff]  ;;  %246 = vadd.xlane.f32.xlu1 %v245_v3  ;;  %v248_v10 = vadd.f32 %v1558_v6, %v1556_v5  ;;  %v265_v14 = vmax.f32 %v1556_v5, %v1558_v6  ;;  %v327_v17 = vld [vmem:[%s1708_s1 + $0x8] sm:$0xff]  ;;  %v328_v20 = vld [vmem:[%s1708_s1 + $0x10] sm:$0xff]  ;;  %vm297_vm3 = vcmask 261312   ;;  %vm324_vm4 = vcmask 1040384   ;;  %s230_s25 = scalar_lea.vmem [#allocation7], %s971_s20  ;;  %s1657_s19 = scalar_lea.hbm %s1711_s4, %s986_s8 }
  0x59   : > { %240 = vadd.xlane.f32.xlu0 %v239_v7  ;;  %v242_v11 = vadd.f32 %v1564_v9, %v1562_v8  ;;  %v259_v12 = vmax.f32 %v1562_v8, %v1564_v9  ;;  %v1011_v18 = vpack.c.bf16 %v327_v17, %v326_v16  ;;  %v329_v21 = vld [vmem:[%s1708_s1 + $0x18] sm:$0xff]  ;;  %v278_v27 = vadd.s32 4294967288, %v273_v25  ;;  %v405_v61 = vld [vmem:[%s1709_s2] sm:$0x3]  ;;  %v561_v7 = vld [vmem:[#allocation5 + $0x8] sm:$0xff]  ;;  %s880_s14 = sshll.u32 %s230_s25, 4  ;;  %s1659_s14 = int_to_ptr.vmem [resolvable:$true] %s880_s14 }
  0x5a   : > { %v1014_v22 = vpack.c.bf16 %v329_v21, %v328_v20  ;;  %v285_v30 = vadd.s32 4294967280, %v273_v25  ;;  %v276_v33 = vsub.s32 %v273_v25, %v1590_v28  ;;  %v292_v35 = vadd.s32 4294967272, %v273_v25  ;;  %v565_v20 = vld [vmem:[#allocation5 + $0x28] sm:$0xff]  ;;  %v631_v24 = vld [vmem:[#allocation5 + $0x238] sm:$0xff]  ;;  %s867_s20 = scalar_lea.sflag [#allocation4], %s1532_s11  ;;  %s1280_s21 = scalar_lea.vmem %s1659_s14, 1024 }
  0x5b   : > { %1012 = vmatpush3.bf16.msra.mxu0 %v1011_v18  ;;  %v281_v32 = vsub.s32 %v278_v27, %v1590_v28  ;;  %vm330_vm5 = vcmask 261120   ;;  %vm410_vm6 = vcmask 1041408   ;;  %vm406_vm7 = vcmask 15360   ;;  %v624_v18 = vld [vmem:[#allocation5 + $0x200] sm:$0xff]  ;;  %v629_v23 = vld [vmem:[#allocation5 + $0x228] sm:$0xff]  ;;  %p1281_p4 = scmp.ne.s32.totalorder %s1659_s14, %s1280_s21  ;;  %s1359_s23 = smov [#allocation7]  }
  0x5c   : > { %249 = vadd.xlane.f32.xlu1 %v248_v10  ;;  %1013 = vmatprep.subr.bf16.mxu0 %v1356_v19  ;;  %v288_v38 = vsub.s32 %v285_v30, %v1590_v28  ;;  %v295_v43 = vsub.s32 %v292_v35, %v1590_v28  ;;  %v563_v10 = vld [vmem:[#allocation5 + $0x18] sm:$0xff]  ;;  %v626_v19 = vld [vmem:[#allocation5 + $0x210] sm:$0xff]  ;;  %v564_v27 = vld [vmem:[#allocation5 + $0x20] sm:$0xff]  ;;  %s1284_s12 = sshll.u32 %s1359_s23, 4  ;;  %s1285_s12 = int_to_ptr.vmem [resolvable:$false] %s1284_s12 }
  0x5d   : > { %243 = vadd.xlane.f32.xlu0 %v242_v11  ;;  %1006 = vmatpush3.msk.msra.mxu1 %vm410_vm6, %v405_v61  ;;  %v625_v11 = vld [vmem:[#allocation5 + $0x208] sm:$0xff]  ;;  %v1082_v21 = vpack.c.bf16 %v626_v19, %v624_v18  ;;  %v628_v30 = vld [vmem:[#allocation5 + $0x220] sm:$0xff]  ;;  %p1282_p6 = pnand %p1281_p4, %p1481_p12  ;;  %s1286_s13 = scalar_lea.vmem %s1285_s12, 2048 }
  0x5e   : > { %v580_v19 = vld [vmem:[#allocation5 + $0xa0] sm:$0xff]  ;;  %p1287_p10 = scmp.lt.s32.totalorder %s1659_s14, %s1285_s12  ;;  %p1288_p13 = scmp.lt.s32.totalorder %s1286_s13, %s1280_s21 }
  0x5f   : > { %1015 = vmatpush3.bf16.msra.mxu0 %v1014_v22  ;;  %v567_v22 = vld [vmem:[#allocation5 + $0x38] sm:$0xff]  ;;  %p1283_p8 = pneg %p1282_p6 }
  0x60   : > { %260 = vmax.xlane.f32.xlu1 %v259_v12  ;;  %v1016_v12 = vpack.c.bf16 %v563_v10, %v561_v7  ;;  %v1020_v25 = vpack.c.bf16 %v567_v22, %v565_v20  ;;  %v640_v7 = vld [vmem:[#allocation5 + $0x280] sm:$0xff]  ;;  %v582_v20 = vld [vmem:[#allocation5 + $0xb0] sm:$0xff]  ;;  %p1289_p3 = por %p1288_p13, %p1287_p10 }
  0x61   : > { %257 = vmax.xlane.f32.xlu0 %v256_v13  ;;  %v627_v13 = vld [vmem:[#allocation5 + $0x218] sm:$0xff] }
  0x62   : > { %v1080_v16 = vpack.c.bf16 %v627_v13, %v625_v11  ;;  %1017 = vmatprep.subr.bf16.mxu0 %v1016_v12  ;;  %v642_v11 = vld [vmem:[#allocation5 + $0x290] sm:$0xff]  ;;  %v581_v12 = vld [vmem:[#allocation5 + $0xa8] sm:$0xff]  ;;  %v583_v13 = vld [vmem:[#allocation5 + $0xb8] sm:$0xff]  ;;  %p1290_p7 = pnand %p1289_p3, %p1283_p8 }
  0x63   : > { %v1036_v18 = vpack.c.bf16 %v583_v13, %v581_v12 }
  0x64   : > { %266 = vmax.xlane.f32.xlu1 %v265_v14  ;;  %v560_v14 = vld [vmem:[#allocation5] sm:$0xff]  ;;  %1081 = vmatprep.subr.bf16.mxu1 %v1080_v16 }
  0x65   : > { %263 = vmax.xlane.f32.xlu0 %v262_v15  ;;  %v562_v15 = vld [vmem:[#allocation5 + $0x10] sm:$0xff] }
  0x66   : > { %v1018_v17 = vpack.c.bf16 %v562_v15, %v560_v14  ;;  %v645_v14 = vld [vmem:[#allocation5 + $0x2a8] sm:$0xff]  ;;  %v647_v15 = vld [vmem:[#allocation5 + $0x2b8] sm:$0xff] }
  0x67   : > { %v1100_v22 = vpack.c.bf16 %v647_v15, %v645_v14 }
  0xe5   : > { %v247_v26 = vpop.xlane.xlu1 %246 }
  0xe6   : > { %v241_v29 = vpop.xlane.xlu0 %240  ;;  %v254_v39 = vmul.f32 0.00390625, %v247_v26  ;;  %v1084_v26 = vpack.c.bf16 %v631_v24, %v629_v23  ;;  %v646_v23 = vld [vmem:[#allocation5 + $0x2b0] sm:$0xff]  ;;  %v585_v24 = vld [vmem:[#allocation5 + $0xc8] sm:$0xff] }
  0xe7   : > { %v252_v34 = vmul.f32 0.00390625, %v241_v29  ;;  %v566_v29 = vld [vmem:[#allocation5 + $0x30] sm:$0xff] }
  0xe8   : > { %v289_v49 = vrot.slane %v254_v39, %v288_v38  ;;  %v568_v39 = vld [vmem:[#allocation5 + $0x40] sm:$0xff] }
  0xe9   : > { %v250_v31 = vpop.xlane.xlu1 %249  ;;  %v277_v42 = vrot.slane %v252_v34, %v276_v33  ;;  %v571_v34 = vld [vmem:[#allocation5 + $0x58] sm:$0xff] }
  0xea   : > { %v244_v36 = vpop.xlane.xlu0 %243  ;;  %v255_v44 = vmul.f32 0.00390625, %v250_v31  ;;  %v1022_v31 = vpack.c.bf16 %v566_v29, %v564_v27  ;;  %v651_v27 = vld [vmem:[#allocation5 + $0x2d8] sm:$0xff]  ;;  %v1038_v29 = vpack.c.bf16 %v582_v20, %v580_v19  ;;  %v596_v19 = vld [vmem:[#allocation5 + $0x120] sm:$0xff]  ;;  %v598_v20 = vld [vmem:[#allocation5 + $0x130] sm:$0xff] }
  0xeb   : > { %v253_v37 = vmul.f32 0.00390625, %v244_v36 }
  0xec   : > { %v296_v51 = vrot.slane %v255_v44, %v295_v43 }
  0xed   : > { %v282_v40 = vrot.slane %v253_v37, %v281_v32  ;;  %v261_v41 = vpop.xlane.xlu1 %260  ;;  %v633_v37 = vld [vmem:[#allocation5 + $0x248] sm:$0xff] }
  0xee   : > { %v258_v45 = vpop.xlane.xlu0 %257  ;;  %v311_v47 = vrot.slane %v261_v41, %v281_v32  ;;  %v630_v32 = vld [vmem:[#allocation5 + $0x230] sm:$0xff] }
  0xef   : > { %v284_v46 = vsel %vm283_vm1, %v282_v40, %v277_v42  ;;  %v307_v48 = vrot.slane %v258_v45, %v276_v33  ;;  %v569_v33 = vld [vmem:[#allocation5 + $0x48] sm:$0xff]  ;;  %v1086_v35 = vpack.c.bf16 %v630_v32, %v628_v30  ;;  %v570_v41 = vld [vmem:[#allocation5 + $0x50] sm:$0xff]  ;;  %v632_v42 = vld [vmem:[#allocation5 + $0x240] sm:$0xff] }
  0xf0   : > { %v291_v55 = vsel %vm290_vm2, %v289_v49, %v284_v46  ;;  %v1024_v36 = vpack.c.bf16 %v571_v34, %v569_v33  ;;  %v1026_v44 = vpack.c.bf16 %v570_v41, %v568_v39  ;;  %v573_v45 = vld [vmem:[#allocation5 + $0x68] sm:$0xff]  ;;  %v575_v46 = vld [vmem:[#allocation5 + $0x78] sm:$0xff]  ;;  %v584_v32 = vld [vmem:[#allocation5 + $0xc0] sm:$0xff] }
  0xf1   : > { %v267_v50 = vpop.xlane.xlu1 %266  ;;  %v312_v56 = vsel %vm283_vm1, %v311_v47, %v307_v48  ;;  %v298_v59 = vsel %vm297_vm3, %v296_v51, %v291_v55  ;;  %v637_v47 = vld [vmem:[#allocation5 + $0x268] sm:$0xff]  ;;  %v1028_v49 = vpack.c.bf16 %v575_v46, %v573_v45  ;;  %v572_v51 = vld [vmem:[#allocation5 + $0x60] sm:$0xff]  ;;  %v638_v55 = vld [vmem:[#allocation5 + $0x270] sm:$0xff] }
  0xf2   : > { %v264_v52 = vpop.xlane.xlu0 %263  ;;  %v321_v53 = vrot.slane %v267_v50, %v295_v43  ;;  %v634_v43 = vld [vmem:[#allocation5 + $0x250] sm:$0xff]  ;;  %v639_v50 = vld [vmem:[#allocation5 + $0x278] sm:$0xff]  ;;  %v648_v34 = vld [vmem:[#allocation5 + $0x2c0] sm:$0xff] }
  0xf3   : > { %v316_v54 = vrot.slane %v264_v52, %v288_v38  ;;  %v635_v38 = vld [vmem:[#allocation5 + $0x258] sm:$0xff]  ;;  %v1090_v48 = vpack.c.bf16 %v634_v43, %v632_v42  ;;  %v574_v52 = vld [vmem:[#allocation5 + $0x70] sm:$0xff]  ;;  %v653_v39 = vld [vmem:[#allocation5 + $0x2e8] sm:$0xff] }
  0xf4   : > { %v1088_v40 = vpack.c.bf16 %v635_v38, %v633_v37  ;;  %v586_v33 = vld [vmem:[#allocation5 + $0xd0] sm:$0xff]  ;;  %v589_v37 = vld [vmem:[#allocation5 + $0xe8] sm:$0xff]  ;;  %v591_v38 = vld [vmem:[#allocation5 + $0xf8] sm:$0xff] }
  0xf5   : > { %v317_v57 = vsel %vm290_vm2, %v316_v54, %v312_v56  ;;  %v636_v54 = vld [vmem:[#allocation5 + $0x260] sm:$0xff]  ;;  %v577_v56 = vld [vmem:[#allocation5 + $0x88] sm:$0xff]  ;;  %v1042_v41 = vpack.c.bf16 %v586_v33, %v584_v32  ;;  %v1044_v43 = vpack.c.bf16 %v591_v38, %v589_v37  ;;  %v590_v45 = vld [vmem:[#allocation5 + $0xf0] sm:$0xff] }
  0xf6   : > { %v322_v58 = vsel %vm297_vm3, %v321_v53, %v317_v57  ;;  %v1092_v53 = vpack.c.bf16 %v639_v50, %v637_v47  ;;  %v579_v57 = vld [vmem:[#allocation5 + $0x98] sm:$0xff]  ;;  %v1094_v61 = vpack.c.bf16 %v638_v55, %v636_v54  ;;  %v652_v46 = vld [vmem:[#allocation5 + $0x2e0] sm:$0xff]  ;;  %v602_v33 = vld [vmem:[#allocation5 + $0x150] sm:$0xff] }
  0xf7   : > { %v325_v60 = vsel %vm324_vm4, %v298_v59, %v322_v58  ;;  %v641_v58 = vld [vmem:[#allocation5 + $0x288] sm:$0xff]  ;;  %v643_v59 = vld [vmem:[#allocation5 + $0x298] sm:$0xff]  ;;  %v600_v32 = vld [vmem:[#allocation5 + $0x140] sm:$0xff] }
  0xf8   : > { %1003 = vmatmul.mubr.msk.f32.vlgmr.msra.gmra.mrb[0].mxu0 %vm330_vm5, %v325_v60  ;;  %v1030_v60 = vpack.c.bf16 %v574_v52, %v572_v51  ;;  %v1096_v10 = vpack.c.bf16 %v643_v59, %v641_v58  ;;  %v595_v50 = vld [vmem:[#allocation5 + $0x118] sm:$0xff]  ;;  %v657_v51 = vld [vmem:[#allocation5 + $0x308] sm:$0xff]  ;;  %v656_v58 = vld [vmem:[#allocation5 + $0x300] sm:$0xff] }
  0xf9   : > { %1019 = vmatpush1.bf16.msra.mxu0 %v1018_v17  ;;  %v1098_v17 = vpack.c.bf16 %v642_v11, %v640_v7  ;;  %v659_v52 = vld [vmem:[#allocation5 + $0x318] sm:$0xff]  ;;  %v666_v37 = vld [vmem:[#allocation5 + $0x350] sm:$0xff] }
  0xfa   : > { %1021 = vmatprep.subr.bf16.mxu0 %v1020_v25  ;;  %v587_v25 = vld [vmem:[#allocation5 + $0xd8] sm:$0xff]  ;;  %v1112_v59 = vpack.c.bf16 %v659_v52, %v657_v51  ;;  %v609_v52 = vld [vmem:[#allocation5 + $0x188] sm:$0xff] }
  0xfd   : > { %1023 = vmatpush1.bf16.msra.mxu0 %v1022_v31  ;;  %v1040_v31 = vpack.c.bf16 %v587_v25, %v585_v24  ;;  %v662_v24 = vld [vmem:[#allocation5 + $0x330] sm:$0xff] }
  0xfe   : > { %1025 = vmatprep.subr.bf16.mxu0 %v1024_v36  ;;  %v650_v36 = vld [vmem:[#allocation5 + $0x2d0] sm:$0xff] }
  0xff   : > { %v1106_v42 = vpack.c.bf16 %v650_v36, %v648_v34  ;;  %v664_v36 = vld [vmem:[#allocation5 + $0x340] sm:$0xff] }
 0x100   : > { %v1122_v38 = vpack.c.bf16 %v666_v37, %v664_v36  ;;  %v685_v36 = vld [vmem:[#allocation5 + $0x3e8] sm:$0xff]  ;;  %v687_v37 = vld [vmem:[#allocation5 + $0x3f8] sm:$0xff] }
 0x101   : > { %1027 = vmatpush1.bf16.msra.mxu0 %v1026_v44  ;;  %v588_v44 = vld [vmem:[#allocation5 + $0xe0] sm:$0xff] }
 0x102   : > { %1029 = vmatprep.subr.bf16.mxu0 %v1028_v49  ;;  %v593_v49 = vld [vmem:[#allocation5 + $0x108] sm:$0xff] }
 0x103   : > { %v1048_v55 = vpack.c.bf16 %v595_v50, %v593_v49  ;;  %v670_v49 = vld [vmem:[#allocation5 + $0x370] sm:$0xff]  ;;  %v1602_v50 = vsub.s32 0, %v1590_v28 }
 0x105   : > { %1031 = vmatpush1.bf16.msra.mxu0 %v1030_v60  ;;  %v658_v60 = vld [vmem:[#allocation5 + $0x310] sm:$0xff] }
 0x1cb   : > { %v400_v62 = vpop.f32.mrb[0].mxu0 }
 0x1cc   : > { %v404_v63 = vmax.f32 %v400_v62, 0.0  ;;  %v1004_v3 = vpop.f32.mrb[1].mxu0  ;;  %v1032_v62 = vpack.c.bf16 %v579_v57, %v577_v56  ;;  %v592_v56 = vld [vmem:[#allocation5 + $0x100] sm:$0xff]  ;;  %v594_v57 = vld [vmem:[#allocation5 + $0x110] sm:$0xff] }
 0x1cd   : > { %v578_v3 = vld [vmem:[#allocation5 + $0x90] sm:$0xff]  ;;  %v1050_v7 = vpack.c.bf16 %v594_v57, %v592_v56  ;;  %v675_v56 = vld [vmem:[#allocation5 + $0x398] sm:$0xff]  ;;  %v608_v57 = vld [vmem:[#allocation5 + $0x180] sm:$0xff] }
 0x1ce   : > { %1008 = vmatmul.mubr.msk.f32.vlgmr.msra.gmra.mrb[0].mxu1 %vm406_vm7, %v404_v63  ;;  %v576_v63 = vld [vmem:[#allocation5 + $0x80] sm:$0xff]  ;;  %1033 = vmatprep.subr.bf16.mxu0 %v1032_v62  ;;  %v599_v62 = vld [vmem:[#allocation5 + $0x138] sm:$0xff] }
 0x1cf   : > { %1083 = vmatpush1.bf16.msra.mxu1 %v1082_v21  ;;  %v1034_v16 = vpack.c.bf16 %v578_v3, %v576_v63  ;;  %v644_v21 = vld [vmem:[#allocation5 + $0x2a0] sm:$0xff]  ;;  %v661_v63 = vld [vmem:[#allocation5 + $0x328] sm:$0xff]  ;;  %v663_v3 = vld [vmem:[#allocation5 + $0x338] sm:$0xff] }
 0x1d0   : > { %1085 = vmatprep.subr.bf16.mxu1 %v1084_v26  ;;  %v649_v26 = vld [vmem:[#allocation5 + $0x2c8] sm:$0xff]  ;;  %v1102_v30 = vpack.c.bf16 %v646_v23, %v644_v21  ;;  %v1116_v12 = vpack.c.bf16 %v663_v3, %v661_v63  ;;  %v660_v21 = vld [vmem:[#allocation5 + $0x320] sm:$0xff]  ;;  %v1054_v23 = vpack.c.bf16 %v598_v20, %v596_v19  ;;  %v674_v63 = vld [vmem:[#allocation5 + $0x390] sm:$0xff] }
 0x1d1   : > { %1035 = vmatpush1.bf16.msra.mxu0 %v1034_v16  ;;  %v1118_v25 = vpack.c.bf16 %v662_v24, %v660_v21  ;;  %v678_v19 = vld [vmem:[#allocation5 + $0x3b0] sm:$0xff]  ;;  %v617_v21 = vld [vmem:[#allocation5 + $0x1c8] sm:$0xff] }
 0x1d2   : > { %1037 = vmatprep.subr.bf16.mxu0 %v1036_v18 }
 0x1d3   : > { %1087 = vmatpush1.bf16.msra.mxu1 %v1086_v35  ;;  %v1104_v35 = vpack.c.bf16 %v651_v27, %v649_v26  ;;  %v601_v26 = vld [vmem:[#allocation5 + $0x148] sm:$0xff]  ;;  %v603_v27 = vld [vmem:[#allocation5 + $0x158] sm:$0xff] }
 0x1d4   : > { %1089 = vmatprep.subr.bf16.mxu1 %v1088_v40  ;;  %v655_v40 = vld [vmem:[#allocation5 + $0x2f8] sm:$0xff] }
 0x1d5   : > { %1039 = vmatpush1.bf16.msra.mxu0 %v1038_v29  ;;  %v1108_v47 = vpack.c.bf16 %v655_v40, %v653_v39  ;;  %v665_v29 = vld [vmem:[#allocation5 + $0x348] sm:$0xff]  ;;  %v607_v40 = vld [vmem:[#allocation5 + $0x178] sm:$0xff] }
 0x1d6   : > { %1041 = vmatprep.subr.bf16.mxu0 %v1040_v31  ;;  %v667_v31 = vld [vmem:[#allocation5 + $0x358] sm:$0xff]  ;;  %v605_v39 = vld [vmem:[#allocation5 + $0x168] sm:$0xff] }
 0x1d7   : > { %1091 = vmatpush1.bf16.msra.mxu1 %v1090_v48  ;;  %v654_v48 = vld [vmem:[#allocation5 + $0x2f0] sm:$0xff]  ;;  %v1120_v34 = vpack.c.bf16 %v667_v31, %v665_v29  ;;  %v680_v31 = vld [vmem:[#allocation5 + $0x3c0] sm:$0xff] }
 0x1d8   : > { %1093 = vmatprep.subr.bf16.mxu1 %v1092_v53  ;;  %v1046_v53 = vpack.c.bf16 %v590_v45, %v588_v44  ;;  %v1110_v54 = vpack.c.bf16 %v654_v48, %v652_v46  ;;  %v604_v44 = vld [vmem:[#allocation5 + $0x160] sm:$0xff]  ;;  %v606_v45 = vld [vmem:[#allocation5 + $0x170] sm:$0xff] }
 0x1d9   : > { %1043 = vmatpush1.bf16.msra.mxu0 %v1042_v41  ;;  %v669_v41 = vld [vmem:[#allocation5 + $0x368] sm:$0xff]  ;;  %v668_v48 = vld [vmem:[#allocation5 + $0x360] sm:$0xff] }
 0x1da   : > { %1045 = vmatprep.subr.bf16.mxu0 %v1044_v43  ;;  %v671_v43 = vld [vmem:[#allocation5 + $0x378] sm:$0xff]  ;;  %v1126_v51 = vpack.c.bf16 %v670_v49, %v668_v48 }
 0x1db   : > { %1095 = vmatpush1.bf16.msra.mxu1 %v1094_v61  ;;  %v597_v61 = vld [vmem:[#allocation5 + $0x128] sm:$0xff]  ;;  %v1124_v46 = vpack.c.bf16 %v671_v43, %v669_v41  ;;  %v622_v41 = vld [vmem:[#allocation5 + $0x1f0] sm:$0xff] }
 0x1dc   : > { %1097 = vmatprep.subr.bf16.mxu1 %v1096_v10  ;;  %v1114_v10 = vpack.c.bf16 %v658_v60, %v656_v58  ;;  %v1052_v11 = vpack.c.bf16 %v599_v62, %v597_v61  ;;  %v610_v58 = vld [vmem:[#allocation5 + $0x190] sm:$0xff]  ;;  %v672_v62 = vld [vmem:[#allocation5 + $0x380] sm:$0xff] }
 0x1dd   : > { %1047 = vmatpush1.bf16.msra.mxu0 %v1046_v53  ;;  %v611_v53 = vld [vmem:[#allocation5 + $0x198] sm:$0xff]  ;;  %v1066_v61 = vpack.c.bf16 %v610_v58, %v608_v57  ;;  %v1130_v3 = vpack.c.bf16 %v674_v63, %v672_v62 }
 0x1de   : > { %1049 = vmatprep.subr.bf16.mxu0 %v1048_v55  ;;  %v1064_v55 = vpack.c.bf16 %v611_v53, %v609_v52 }
 0x1df   : > { %1099 = vmatpush1.bf16.msra.mxu1 %v1098_v17 }
 0x1e0   : > { %1101 = vmatprep.subr.bf16.mxu1 %v1100_v22 }
 0x1e1   : > { %1051 = vmatpush1.bf16.msra.mxu0 %v1050_v7  ;;  %v613_v7 = vld [vmem:[#allocation5 + $0x1a8] sm:$0xff] }
 0x1e2   : > { %1053 = vmatprep.subr.bf16.mxu0 %v1052_v11  ;;  %v677_v11 = vld [vmem:[#allocation5 + $0x3a8] sm:$0xff] }
 0x1e3   : > { %1103 = vmatpush1.bf16.msra.mxu1 %v1102_v30  ;;  %v1056_v30 = vpack.c.bf16 %v603_v27, %v601_v26  ;;  %v616_v26 = vld [vmem:[#allocation5 + $0x1c0] sm:$0xff]  ;;  %v618_v27 = vld [vmem:[#allocation5 + $0x1d0] sm:$0xff] }
 0x1e4   : > { %1105 = vmatprep.subr.bf16.mxu1 %v1104_v35  ;;  %v1058_v35 = vpack.c.bf16 %v602_v33, %v600_v32  ;;  %v682_v32 = vld [vmem:[#allocation5 + $0x3d0] sm:$0xff]  ;;  %v621_v33 = vld [vmem:[#allocation5 + $0x1e8] sm:$0xff] }
 0x1e5   : > { %1055 = vmatpush1.bf16.msra.mxu0 %v1054_v23  ;;  %v681_v23 = vld [vmem:[#allocation5 + $0x3c8] sm:$0xff] }
 0x1e6   : > { %1057 = vmatprep.subr.bf16.mxu0 %v1056_v30  ;;  %v1074_v30 = vpack.c.bf16 %v618_v27, %v616_v26 }
 0x1e7   : > { %1107 = vmatpush1.bf16.msra.mxu1 %v1106_v42  ;;  %v1060_v42 = vpack.c.bf16 %v607_v40, %v605_v39  ;;  %v1140_v39 = vpack.c.bf16 %v687_v37, %v685_v36  ;;  %v620_v40 = vld [vmem:[#allocation5 + $0x1e0] sm:$0xff] }
 0x1e8   : > { %1109 = vmatprep.subr.bf16.mxu1 %v1108_v47  ;;  %v1062_v47 = vpack.c.bf16 %v606_v45, %v604_v44  ;;  %v1078_v43 = vpack.c.bf16 %v622_v41, %v620_v40  ;;  %v686_v44 = vld [vmem:[#allocation5 + $0x3f0] sm:$0xff] }
 0x1e9   : > { %1059 = vmatpush1.bf16.msra.mxu0 %v1058_v35  ;;  %v623_v35 = vld [vmem:[#allocation5 + $0x1f8] sm:$0xff] }
 0x1ea   : > { %1061 = vmatprep.subr.bf16.mxu0 %v1060_v42  ;;  %v684_v42 = vld [vmem:[#allocation5 + $0x3e0] sm:$0xff] }
 0x1eb   : > { %1111 = vmatpush1.bf16.msra.mxu1 %v1110_v54  ;;  %v673_v54 = vld [vmem:[#allocation5 + $0x388] sm:$0xff]  ;;  %v1142_v45 = vpack.c.bf16 %v686_v44, %v684_v42 }
 0x1ec   : > { %1113 = vmatprep.subr.bf16.mxu1 %v1112_v59  ;;  %v1128_v60 = vpack.c.bf16 %v675_v56, %v673_v54 }
 0x1ed   : > { %1063 = vmatpush1.bf16.msra.mxu0 %v1062_v47 }
 0x1ee   : > { %1065 = vmatprep.subr.bf16.mxu0 %v1064_v55 }
 0x1ef   : > { %1115 = vmatpush1.bf16.msra.mxu1 %v1114_v10  ;;  %v615_v10 = vld [vmem:[#allocation5 + $0x1b8] sm:$0xff] }
 0x1f0   : > { %1117 = vmatprep.subr.bf16.mxu1 %v1116_v12  ;;  %v1068_v12 = vpack.c.bf16 %v615_v10, %v613_v7 }
 0x1f1   : > { %1067 = vmatpush1.bf16.msra.mxu0 %v1066_v61 }
 0x1f2   : > { %1069 = vmatprep.subr.bf16.mxu0 %v1068_v12 }
 0x1f3   : > { %1119 = vmatpush1.bf16.msra.mxu1 %v1118_v25  ;;  %v683_v25 = vld [vmem:[#allocation5 + $0x3d8] sm:$0xff] }
 0x1f4   : > { %1121 = vmatprep.subr.bf16.mxu1 %v1120_v34  ;;  %v1136_v29 = vpack.c.bf16 %v683_v25, %v681_v23  ;;  %v1138_v34 = vpack.c.bf16 %v682_v32, %v680_v31 }
 0x1f7   : > { %1123 = vmatpush1.bf16.msra.mxu1 %v1122_v38  ;;  %v1076_v38 = vpack.c.bf16 %v623_v35, %v621_v33 }
 0x1f8   : > { %1125 = vmatprep.subr.bf16.mxu1 %v1124_v46 }
 0x1fb   : > { %1127 = vmatpush1.bf16.msra.mxu1 %v1126_v51 }
 0x1fc   : > { %1129 = vmatprep.subr.bf16.mxu1 %v1128_v60 }
 0x1ff   : > { %1131 = vmatpush1.bf16.msra.mxu1 %v1130_v3 }
 0x2a1   : > { %v480_v13 = vpop.f32.mrb[0].mxu1 }
 0x2a2   : > { %v485_v14 = vrot.slane %v480_v13, 1  ;;  %v1009_v15 = vpop.f32.mrb[1].mxu1 }
 0x2a3   : > { %v614_v15 = vld [vmem:[#allocation5 + $0x1b0] sm:$0xff] }
 0x2a4   : > { %v487_v16 = vadd.f32 %v485_v14, %v480_v13  ;;  %v679_v13 = vld [vmem:[#allocation5 + $0x3b8] sm:$0xff]  ;;  %v612_v14 = vld [vmem:[#allocation5 + $0x1a0] sm:$0xff] }
 0x2a6   : > { %v977_v17 = vmul.f32 -1.442695, %v487_v16  ;;  %v1132_v16 = vpack.c.bf16 %v679_v13, %v677_v11 }
 0x2a8   : > { %1210 = vpow2.f32 %v977_v17  ;;  %v1070_v17 = vpack.c.bf16 %v614_v15, %v612_v14  ;;  %1133 = vmatprep.subr.bf16.mxu1 %v1132_v16 }
 0x2aa   : > { %1071 = vmatpush1.bf16.msra.mxu0 %v1070_v17 }
 0x2b2   : > { %v1211_v18 = vpop.eup %1210 }
 0x2b3   : > { %v491_v22 = vadd.f32 1.0, %v1211_v18  ;;  %v676_v18 = vld [vmem:[#allocation5 + $0x3a0] sm:$0xff] }
 0x2b4   : > { %v1134_v20 = vpack.c.bf16 %v678_v19, %v676_v18 }
 0x2b5   : > { %1212 = vrcp.f32 %v491_v22  ;;  %v619_v22 = vld [vmem:[#allocation5 + $0x1d8] sm:$0xff] }
 0x2b6   : > { %v1072_v24 = vpack.c.bf16 %v619_v22, %v617_v21  ;;  %1135 = vmatpush1.bf16.msra.mxu1 %v1134_v20 }
 0x2b7   : > { %1137 = vmatprep.subr.bf16.mxu1 %v1136_v29 }
 0x2b8   : > { %1073 = vmatprep.subr.bf16.mxu0 %v1072_v24 }
 0x2b9   : > { %1075 = vmatpush1.bf16.msra.mxu0 %v1074_v30 }
 0x2ba   : > { %1139 = vmatpush1.bf16.msra.mxu1 %v1138_v34  ;;  %1077 = vmatprep.subr.bf16.mxu0 %v1076_v38 }
 0x2bb   : > { %1141 = vmatprep.subr.bf16.mxu1 %v1140_v39 }
 0x2bd   : > { %1079 = vmatpush1.bf16.msra.mxu0 %v1078_v43 }
 0x2be   : > { %1143 = vmatpush1.bf16.msra.mxu1 %v1142_v45 }
 0x2bf   : > { %v1213_v59 = vpop.eup %1212 }
 0x2c0   : > { %v497_v28 = vrot.slane %v1213_v59, %v1602_v50 }
 0x2c2   : > { %503 = vbcast.lane.b32.xlu1 %v497_v28, 264  ;;  %499 = vbcast.lane.b32.xlu0 %v497_v28, 256 }
 0x2c6   : > { %507 = vbcast.lane.b32.xlu1 %v497_v28, 272 }
 0x2ca   : > { %511 = vbcast.lane.b32.xlu1 %v497_v28, 280 }
 0x334   : > { %v504_v46 = vpop.permute.xlu1 %503  ;;  %v500_v47 = vpop.permute.xlu0 %499 }
 0x335   : > { %v1606_v48 = vmul.f32 %v504_v46, %v1562_v8  ;;  %v1609_v49 = vmul.f32 %v504_v46, %v1564_v9  ;;  %v1612_v51 = vmul.f32 %v500_v47, %v1550_v2  ;;  %v1615_v52 = vmul.f32 %v500_v47, %v1554_v4 }
 0x337   : > { %v521_v8 = vadd.f32 %v1606_v48, %v1612_v51  ;;  %v530_v9 = vadd.f32 %v1609_v49, %v1615_v52 }
 0x338   : > { %v508_v53 = vpop.permute.xlu1 %507 }
 0x339   : > { %v1618_v54 = vmul.f32 %v508_v53, %v1546_v0  ;;  %v1621_v55 = vmul.f32 %v508_v53, %v1548_v1 }
 0x33b   : > { %v522_v2 = vadd.f32 %v521_v8, %v1618_v54  ;;  %v531_v57 = vadd.f32 %v530_v9, %v1621_v55  ;;  %v542_v1 = vmax.f32 %v1612_v51, %v1618_v54  ;;  %v551_v58 = vmax.f32 %v1615_v52, %v1621_v55 }
 0x33c   : > { %v512_v56 = vpop.permute.xlu1 %511 }
 0x33d   : > { %v1630_v4 = vmul.f32 %v512_v56, %v1556_v5  ;;  %v1633_v0 = vmul.f32 %v512_v56, %v1558_v6 }
 0x33f   : > { %v523_v59 = vadd.f32 %v522_v2, %v1630_v4  ;;  %v532_v60 = vadd.f32 %v531_v57, %v1633_v0  ;;  %v543_v61 = vmax.f32 %v1606_v48, %v1630_v4  ;;  %v552_v5 = vmax.f32 %v1609_v49, %v1633_v0 }
 0x341   : > { %v524_v62 = vrot.slane %v523_v59, 4  ;;  %v533_v63 = vrot.slane %v532_v60, 4  ;;  %v544_v6 = vmax.f32 %v542_v1, %v543_v61  ;;  %v553_v28 = vmax.f32 %v551_v58, %v552_v5 }
 0x343   : > { %v525_v3 = vadd.f32 %v524_v62, %v523_v59  ;;  %v534_v7 = vadd.f32 %v533_v63, %v532_v60  ;;  %v545_v10 = vrot.slane %v544_v6, 4  ;;  %v554_v11 = vrot.slane %v553_v28, 4 }
 0x345   : > { %v526_v12 = vrot.slane %v525_v3, 2  ;;  %v546_v13 = vmax.f32 %v544_v6, %v545_v10  ;;  %v535_v14 = vrot.slane %v534_v7, 2  ;;  %v555_v15 = vmax.f32 %v553_v28, %v554_v11 }
 0x347   : > { %v527_v16 = vadd.f32 %v526_v12, %v525_v3  ;;  %v547_v17 = vrot.slane %v546_v13, 2  ;;  %v536_v18 = vadd.f32 %v535_v14, %v534_v7  ;;  %v556_v19 = vrot.slane %v555_v15, 2 }
 0x349   : > { %v537_v20 = vrot.slane %v536_v18, 1  ;;  %v557_v21 = vmax.f32 %v555_v15, %v556_v19  ;;  %v528_v22 = vrot.slane %v527_v16, 1  ;;  %v548_v23 = vmax.f32 %v546_v13, %v547_v17 }
 0x34b   : > { %v538_v24 = vadd.f32 %v537_v20, %v536_v18  ;;  %v558_v25 = vrot.slane %v557_v21, 1  ;;  %v529_v26 = vadd.f32 %v528_v22, %v527_v16  ;;  %v549_v27 = vrot.slane %v548_v23, 1 }
 0x34d   : > { %v541_v29 = vmul.f32 0.03125, %v538_v24  ;;  %v559_v30 = vmax.f32 %v557_v21, %v558_v25  ;;  %v540_v31 = vmul.f32 0.03125, %v529_v26  ;;  %v550_v32 = vmax.f32 %v548_v23, %v549_v27 }
 0x34f   : > { %752 = vmatprep.mubr.f32.mxu0 %v541_v29  ;;  %823 = vmatprep.mubr.f32.mxu1 %v559_v30 }
 0x350   : > { %753 = vmatmul.mubr.f32.vlgmr.msra.gmra.mrb[2].mxu0 %v540_v31  ;;  %824 = vmatmul.mubr.f32.vlgmr.msra.gmra.mrb[2].mxu1 %v550_v32 }
 0x423   : > { %v754_v33 = vpop.f32.mrb[2].mxu0  ;;  %v825_v34 = vpop.f32.mrb[2].mxu1 }
 0x424   : > { %v826_v35 = vadd.f32 %v825_v34, %v754_v33  ;;  %v756_v36 = vpop.f32.mrb[3].mxu0  ;;  %v827_v37 = vpop.f32.mrb[3].mxu1 }
 0x425   : > { %v828_v38 = vadd.f32 %v827_v37, %v756_v36 }
 0x426   : > { %v978_v39 = vmul.f32 -1.442695, %v826_v35 }
 0x427   : > { %v979_v40 = vmul.f32 -1.442695, %v828_v38 }
 0x428   : > { %1214 = vpow2.f32 %v978_v39 }
 0x429   : > { %1216 = vpow2.f32 %v979_v40 }
 0x432   : > { %v1215_v41 = vpop.eup %1214 }
 0x433   : > { %v1217_v42 = vpop.eup %1216  ;;  %v836_v43 = vadd.f32 1.0, %v1215_v41 }
 0x434   : > { %v837_v44 = vadd.f32 1.0, %v1217_v42 }
 0x435   : > { %1218 = vrcp.f32 %v836_v43 }
 0x436   : > { %1220 = vrcp.f32 %v837_v44 }
 0x43f   : > { %v1219_v45 = vpop.eup %1218 }
 0x440   : > { %v1221_v46 = vpop.eup %1220  ;;  %v845_v47 = vrot.slane %v1219_v45, %v1602_v50 }
 0x441   : > { %v849_v53 = vrot.slane %v1221_v46, %v1602_v50 }
 0x442   : > { %v850_v8 = vmul.f32 %v845_v47, %v1612_v51  ;;  %v852_v9 = vmul.f32 %v845_v47, %v1606_v48  ;;  %v854_v56 = vmul.f32 %v845_v47, %v1618_v54  ;;  %v856_v2 = vmul.f32 %v845_v47, %v1630_v4 }
 0x443   : > { %v851_v50 = vmul.f32 %v849_v53, %v1615_v52  ;;  %v853_v51 = vmul.f32 %v849_v53, %v1609_v49  ;;  %v855_v48 = vmul.f32 %v849_v53, %v1621_v55  ;;  %v857_v54 = vmul.f32 %v849_v53, %v1633_v0 }
 0x444   : > { %858 = vst [vmem:[%s230_s25] sm:$0xff] %v850_v8  ;;  %860 = vst [vmem:[%s230_s25 + $0x10] sm:$0xff] %v852_v9 }
 0x445   : > { %862 = vst [vmem:[%s230_s25 + $0x20] sm:$0xff] %v854_v56  ;;  %864 = vst [vmem:[%s230_s25 + $0x30] sm:$0xff] %v856_v2 }
 0x446   : > { %859 = vst [vmem:[%s230_s25 + $0x8] sm:$0xff] %v851_v50  ;;  %861 = vst [vmem:[%s230_s25 + $0x18] sm:$0xff] %v853_v51 }
 0x447   : > { %863 = vst [vmem:[%s230_s25 + $0x28] sm:$0xff] %v855_v48  ;;  %865 = vst [vmem:[%s230_s25 + $0x38] sm:$0xff] %v857_v54 }
 0x448   : > { %1293 = shalt.err (!%p1290_p7)
}
 0x449   : > { %s1294_s9 = scalar_lea.hbm %s1657_s19, 1024  ;;  %s1298_s6 = scalar_lea.hbm %s1711_s4, 2048 }
 0x44a   : > { %p1295_p9 = scmp.ne.s32.totalorder %s1657_s19, %s1294_s9  ;;  %p1299_p5 = scmp.lt.u32.totalorder %s1657_s19, %s1711_s4 }
 0x44b   : > { %p1300_p11 = scmp.lt.u32.totalorder %s1298_s6, %s1294_s9  ;;  %p1302_p4 = scmp.lt.u32.totalorder %s1294_s9, %s1657_s19 }
 0x44c   : > { %p1296_p1 = pnand %p1295_p9, %p1481_p12 }
 0x44d   : > { %p1301_p2 = por %p1300_p11, %p1299_p5 }
 0x44e   : > { %p1297_p0 = pneg %p1296_p1 }
 0x44f   : > { %p1303_p6 = por %p1302_p4, %p1301_p2 }
 0x451   : > { %p1304_p8 = pnand %p1303_p6, %p1297_p0 }
 0x453   : > { %1307 = shalt.err (!%p1304_p8)
}
 0x454   : > { %s1360_s8 = smov 256   ;;  %s1361_s25 = smov 16  }
 0x455   : > { %1152 = dma.vmem_to_hbm [thread:$0]  (%p1481_p12), %s1659_s14, 1024, %s1657_s19, %s867_s20, %s1360_s8, %s1360_s8, %s1361_s25  }
 0x456 PF: > { %s895_s5 = sand.u32 1, %s1338_s15   ;;  %p1726_p10 = scmp.ne.s32.totalorder %s1716_s22, 0 }
 0x457   : > { %p1727_p13 = scmp.ge.s32.totalorder %s1350_s18, 2  ;;  %s896_s29 = scalar_lea.sflag [#allocation4], %s895_s5 }
 0x459   : > { %p1163_p3 = pnand %p1727_p13, %p1726_p10 }
 0x45b   : > { %1333 = dma.done.wait (!%p1163_p3), %s896_s29, 1024  }
 0x45c   : > { %1335 = vsyncadd (!%p1163_p3), %s896_s29, 4294966272  ;;  %p18_p7 = scmp.ge.s32.totalorder %s1443_s27, 4   ;;  %s1728_s15 = smov %s1342_s16 }
 0x45d   : > { %s1729_s16 = smov %s1346_s17  ;;  %s1730_s17 = smov %s1477_s24 }
 0x45e   : > { %s1731_s18 = smov %s1443_s27  ;;  %20 = sbr.rel (!%p18_p7) target bundleno = 6 (0x6), region = 85 }
 0x465   :  { %901 = vsyncpa [#allocation3], 1 }
 0x466   :  { %903 = vsyncpa [#allocation3 + $0x1], 1 }
 0x467   :  { %904 = vsyncpa [#allocation6], 1 }
 0x468   :  { %905 = vsyncpa [#allocation4], 1 }
 0x469   :  { %907 = vsyncpa [#allocation4 + $0x1], 1 }

</bundles_post_ra>
